<compile_context>
chip_gen: v7x
topology: tpu7x:2x2x1
jax: 0.10.0
libtpu: 0.0.40
codegen_flags: <defaults>
</compile_context>

<pallas_src>
import functools

import jax
import jax.numpy as jnp
from jax.experimental import pallas as pl
from jax.experimental.pallas import tpu as pltpu

_LANES = 128
_FEATS = 2                    # in_features of nn.Linear(2, 1)
_ROW_W = _FEATS * _LANES      # 256: one output row's worth of interleaved inputs


def _round_up(a, m):
    return ((a + m - 1) // m) * m


def _logreg_kernel(x_ref, s_ref, b_ref, o_ref):
    # x_ref: (TR, 256) f32, native interleaved layout [x0, x1, x0, x1, ...]
    # s_ref: (256, 128) f32 selection/weight matrix (constant block, resident)
    # b_ref: (1, 128)  f32 bias row (broadcast over sublanes)
    # One MXU matmul performs both the 2-feature contraction and the lane
    # de-interleave, yielding a dense (TR, 128) block of logits.
    z = jnp.dot(x_ref[...], s_ref[...], preferred_element_type=jnp.float32)
    z = z + b_ref[...]
    # Exact sigmoid: EUP exp + exact divide (no approximate reciprocal).
    o_ref[...] = (1.0 / (1.0 + jnp.exp(-z))).astype(o_ref.dtype)


@functools.partial(jax.jit, static_argnames=("tile_rows",))
def logistic_regression(x, w_t, b, *, tile_rows=2048):
    """x: (B, 2) f32, w_t: (2, 1) f32 (pre-transposed), b: (1,) f32 -> (B, 1) f32."""
    B, F = x.shape
    assert F == _FEATS and w_t.shape == (F, 1) and b.shape == (1,)
    assert tile_rows % 8 == 0

    x = x.astype(jnp.float32)
    w_t = w_t.astype(jnp.float32)
    b = b.astype(jnp.float32)

    # --- batch tiling: 128 batch elements per lane-dense output row ---
    rows = -(-B // _LANES)                        # ceil(B / 128)
    tr = min(tile_rows, _round_up(rows, 8))       # tile rows (multiple of 8)
    rows_pad = _round_up(rows, tr)
    # Give the "parallel" grid axis >= 2 steps when there is enough work so
    # v7x's two TensorCores both get a share of the batch.
    if rows_pad // tr < 2 and rows > 8:
        tr = _round_up((rows + 1) // 2, 8)
        rows_pad = _round_up(rows, tr)
    grid = (rows_pad // tr,)

    # --- native-layout input view (free reshape; pad only if needed) ---
    x_flat = x.reshape(-1)                        # row-major (B*2,) — free
    need = rows_pad * _ROW_W
    if need != x_flat.shape[0]:
        x_flat = jnp.pad(x_flat, (0, need - x_flat.shape[0]))
    x_tiles = x_flat.reshape(rows_pad, _ROW_W)    # (rows_pad, 256), interleaved

    # --- fused de-interleave + weights: S[2j, j] = w0, S[2j+1, j] = w1 ---
    w0 = w_t[0, 0]
    w1 = w_t[1, 0]
    r = jnp.arange(_ROW_W, dtype=jnp.int32)[:, None]     # (256, 1)
    c = jnp.arange(_LANES, dtype=jnp.int32)[None, :]     # (1, 128)
    s_mat = (jnp.where(r == 2 * c, w0, 0.0)
             + jnp.where(r == 2 * c + 1, w1, 0.0))       # (256, 128) f32
    bias_row = jnp.full((1, _LANES), b[0], dtype=jnp.float32)

    out = pl.pallas_call(
        _logreg_kernel,
        out_shape=jax.ShapeDtypeStruct((rows_pad, _LANES), jnp.float32),
        grid=grid,
        in_specs=[
            pl.BlockSpec((tr, _ROW_W), lambda i: (i, 0)),       # x tiles
            pl.BlockSpec((_ROW_W, _LANES), lambda i: (0, 0)),   # S (resident)
            pl.BlockSpec((1, _LANES), lambda i: (0, 0)),        # bias row
        ],
        out_specs=pl.BlockSpec((tr, _LANES), lambda i: (i, 0)),  # lane-dense out
        compiler_params=pltpu.CompilerParams(
            dimension_semantics=("parallel",),
        ),
    )(x_tiles, s_mat, bias_row)

    # Row r, lane j  <->  batch index r*128 + j; slice folds under jit when
    # B happens to be a multiple of the padded extent.
    return out.reshape(-1)[:B].reshape(B, 1)


if __name__ == "__main__":
    key = jax.random.PRNGKey(0)
    k_x, k_w, k_b = jax.random.split(key, 3)

    B, IN, OUT = 8, 2, 1
    x = jax.random.normal(k_x, (B, IN), dtype=jnp.float32)

    # Deterministic parameter init mimicking nn.Linear(2, 1):
    # U(-1/sqrt(in_features), 1/sqrt(in_features)); W stored pre-transposed (in, out).
    bound = 1.0 / jnp.sqrt(jnp.float32(IN))
    w_t = jax.random.uniform(k_w, (IN, OUT), dtype=jnp.float32,
                             minval=-bound, maxval=bound)
    b = jax.random.uniform(k_b, (OUT,), dtype=jnp.float32,
                           minval=-bound, maxval=bound)

    out = jax.block_until_ready(logistic_regression(x, w_t, b))

    # Reference check in plain JAX (exact sigmoid path -> tight tolerance).
    ref = jax.nn.sigmoid(x @ w_t + b[None, :])
    assert out.shape == (B, OUT)
    assert jnp.allclose(out, ref, atol=1e-4, rtol=1e-4), "mismatch vs reference"
    print("KERNEL_OK")
</pallas_src>

<mosaic_0001>
module attributes {stable_mosaic.version = 11 : i64} {
  func.func @_logreg_kernel(%arg0: i32, %arg1: memref<8x256xf32, #tpu.memory_space<vmem>>, %arg2: memref<256x128xf32, #tpu.memory_space<vmem>>, %arg3: memref<1x128xf32, #tpu.memory_space<vmem>>, %arg4: memref<8x128xf32, #tpu.memory_space<vmem>>) attributes {dimension_semantics = [#tpu.dimension_semantics<parallel>], iteration_bounds = array<i64: 1>, scalar_prefetch = 0 : i64, scratch_operands = 0 : i64, tpu.core_type = #tpu.core_type<tc>, window_params = [{transform_indices = @transform_0, window_bounds = array<i64: 8, 256>}, {pipeline_mode = #tpu.pipeline_mode<synchronous>, transform_indices = @transform_1, window_bounds = array<i64: 256, 128>}, {pipeline_mode = #tpu.pipeline_mode<synchronous>, transform_indices = @transform_2, window_bounds = array<i64: 1, 128>}, {transform_indices = @transform_3, window_bounds = array<i64: 8, 128>}]} {
    %c0 = arith.constant 0 : index
    %c0_0 = arith.constant 0 : index
    %0 = vector.load %arg1[%c0, %c0_0] : memref<8x256xf32, #tpu.memory_space<vmem>>, vector<8x256xf32>
    %c0_1 = arith.constant 0 : index
    %c0_2 = arith.constant 0 : index
    %1 = vector.load %arg2[%c0_1, %c0_2] : memref<256x128xf32, #tpu.memory_space<vmem>>, vector<256x128xf32>
    %cst = arith.constant dense<0.000000e+00> : vector<8x128xf32>
    %2 = tpu.matmul %0, %1, %cst {dimension_numbers = #tpu.dot_dimension_numbers<[1], [0], [0], [1], [0, 0, 1, 1], [], []>} : vector<8x256xf32>, vector<256x128xf32>, vector<8x128xf32> -> vector<8x128xf32>
    %c0_3 = arith.constant 0 : index
    %c0_4 = arith.constant 0 : index
    %3 = vector.load %arg3[%c0_3, %c0_4] : memref<1x128xf32, #tpu.memory_space<vmem>>, vector<1x128xf32>
    %4 = vector.broadcast %3 : vector<1x128xf32> to vector<8x128xf32>
    %5 = arith.addf %2, %4 : vector<8x128xf32>
    %cst_5 = arith.constant 0.000000e+00 : f32
    %6 = vector.broadcast %cst_5 : f32 to vector<8x128xf32>
    %7 = arith.subf %6, %5 : vector<8x128xf32>
    %8 = math.exp %7 : vector<8x128xf32>
    %cst_6 = arith.constant 1.000000e+00 : f32
    %9 = vector.broadcast %cst_6 : f32 to vector<8x128xf32>
    %10 = arith.addf %9, %8 : vector<8x128xf32>
    %cst_7 = arith.constant 1.000000e+00 : f32
    %11 = vector.broadcast %cst_7 : f32 to vector<8x128xf32>
    %12 = arith.divf %11, %10 : vector<8x128xf32>
    %c0_8 = arith.constant 0 : index
    %c0_9 = arith.constant 0 : index
    %13 = vector.load %arg4[%c0_8, %c0_9] : memref<8x128xf32, #tpu.memory_space<vmem>>, vector<8x128xf32>
    tpu.vector_store %arg4[%c0_8, %c0_9], %12 {strides = array<i32>} : memref<8x128xf32, #tpu.memory_space<vmem>>, vector<8x128xf32>,
    return
  }
  func.func @transform_0(%arg0: i32) -> (i32, i32) {
    %c0_i32 = arith.constant 0 : i32
    %c0_i32_0 = arith.constant 0 : i32
    return %arg0, %c0_i32 : i32, i32
  }
  func.func @transform_1(%arg0: i32) -> (i32, i32) {
    %c0_i32 = arith.constant 0 : i32
    %c0_i32_0 = arith.constant 0 : i32
    %c0_i32_1 = arith.constant 0 : i32
    return %c0_i32, %c0_i32_0 : i32, i32
  }
  func.func @transform_2(%arg0: i32) -> (i32, i32) {
    %c0_i32 = arith.constant 0 : i32
    %c0_i32_0 = arith.constant 0 : i32
    %c0_i32_1 = arith.constant 0 : i32
    return %c0_i32, %c0_i32_0 : i32, i32
  }
  func.func @transform_3(%arg0: i32) -> (i32, i32) {
    %c0_i32 = arith.constant 0 : i32
    %c0_i32_0 = arith.constant 0 : i32
    return %arg0, %c0_i32 : i32, i32
  }
}

</mosaic_0001>

<bundles_post_ra>
// kernel: logistic_regression.1
= control target key start
LH: loop header
LB: loop body
LE: loop exit
PB: predicated region body
PF: predicated region fallthrough
CT: control target
= control target key end

     0   :  { %s336_s1 = inlined_call_operand.vmem [shape: f32[256,128], index: 1, kind: input, shape index: {}]   ;;  %s337_s0 = inlined_call_operand.vmem [shape: f32[8,256], index: 0, kind: input, shape index: {}]   ;;  %s338_s2 = inlined_call_operand.vmem [shape: f32[1,128], index: 2, kind: input, shape index: {}]   ;;  %s339_s3 = inlined_call_operand.vmem [shape: f32[8,128], index: 3, kind: output, shape index: {}]  }
   0x1   :  { %v32_v0 = vld [vmem:[%s336_s1 + $0x80] sm:$0xff]  ;;  %v33_v1 = vld [vmem:[%s336_s1 + $0x88] sm:$0xff]  ;;  %v34_v5 = vld [vmem:[%s336_s1 + $0x90] sm:$0xff] }
   0x2   :  { %v16_v2 = vld [vmem:[%s336_s1] sm:$0xff]  ;;  %v172_v3 = vpack.c.bf16 %v33_v1, %v32_v0  ;;  %v17_v4 = vld [vmem:[%s336_s1 + $0x8] sm:$0xff]  ;;  %v35_v6 = vld [vmem:[%s336_s1 + $0x98] sm:$0xff] }
   0x3   :  { %v174_v7 = vpack.c.bf16 %v17_v4, %v16_v2  ;;  %v176_v8 = vpack.c.bf16 %v35_v6, %v34_v5  ;;  %v18_v9 = vld [vmem:[%s336_s1 + $0x10] sm:$0xff]  ;;  %v19_v10 = vld [vmem:[%s336_s1 + $0x18] sm:$0xff]  ;;  %v36_v11 = vld [vmem:[%s336_s1 + $0xa0] sm:$0xff] }
   0x4   :  { %173 = vmatprep.subr.bf16.mxu0 %v172_v3  ;;  %v37_v12 = vld [vmem:[%s336_s1 + $0xa8] sm:$0xff]  ;;  %v178_v13 = vpack.c.bf16 %v19_v10, %v18_v9  ;;  %v20_v15 = vld [vmem:[%s336_s1 + $0x20] sm:$0xff]  ;;  %v38_v17 = vld [vmem:[%s336_s1 + $0xb0] sm:$0xff] }
   0x5   :  { %175 = vmatpush3.bf16.msra.mxu0 %v174_v7  ;;  %v180_v14 = vpack.c.bf16 %v37_v12, %v36_v11  ;;  %v21_v16 = vld [vmem:[%s336_s1 + $0x28] sm:$0xff]  ;;  %v39_v18 = vld [vmem:[%s336_s1 + $0xb8] sm:$0xff]  ;;  %v22_v21 = vld [vmem:[%s336_s1 + $0x30] sm:$0xff] }
   0x6   :  { %177 = vmatprep.subr.bf16.mxu0 %v176_v8  ;;  %v182_v19 = vpack.c.bf16 %v21_v16, %v20_v15  ;;  %v184_v20 = vpack.c.bf16 %v39_v18, %v38_v17  ;;  %v23_v22 = vld [vmem:[%s336_s1 + $0x38] sm:$0xff]  ;;  %v40_v23 = vld [vmem:[%s336_s1 + $0xc0] sm:$0xff]  ;;  %v41_v24 = vld [vmem:[%s336_s1 + $0xc8] sm:$0xff] }
   0x7   :  { %v15_v25 = vld [vmem:[%s337_s0 + $0x8] sm:$0xff]  ;;  %v186_v26 = vpack.c.bf16 %v23_v22, %v22_v21  ;;  %v188_v27 = vpack.c.bf16 %v41_v24, %v40_v23  ;;  %v24_v28 = vld [vmem:[%s336_s1 + $0x40] sm:$0xff]  ;;  %v42_v30 = vld [vmem:[%s336_s1 + $0xd0] sm:$0xff] }
   0x8   :  { %119 = vmatprep.mubr.f32.mxu0 %v15_v25  ;;  %v25_v29 = vld [vmem:[%s336_s1 + $0x48] sm:$0xff]  ;;  %v43_v31 = vld [vmem:[%s336_s1 + $0xd8] sm:$0xff]  ;;  %v26_v34 = vld [vmem:[%s336_s1 + $0x50] sm:$0xff] }
   0x9   :  { %179 = vmatpush3.bf16.msra.mxu0 %v178_v13  ;;  %v190_v32 = vpack.c.bf16 %v25_v29, %v24_v28  ;;  %v192_v33 = vpack.c.bf16 %v43_v31, %v42_v30  ;;  %v27_v35 = vld [vmem:[%s336_s1 + $0x58] sm:$0xff]  ;;  %v44_v36 = vld [vmem:[%s336_s1 + $0xe0] sm:$0xff]  ;;  %v45_v37 = vld [vmem:[%s336_s1 + $0xe8] sm:$0xff] }
   0xa   :  { %181 = vmatprep.subr.bf16.mxu0 %v180_v14  ;;  %v194_v38 = vpack.c.bf16 %v27_v35, %v26_v34  ;;  %v196_v39 = vpack.c.bf16 %v45_v37, %v44_v36  ;;  %v28_v40 = vld [vmem:[%s336_s1 + $0x60] sm:$0xff]  ;;  %v29_v41 = vld [vmem:[%s336_s1 + $0x68] sm:$0xff]  ;;  %v46_v42 = vld [vmem:[%s336_s1 + $0xf0] sm:$0xff] }
   0xb   :  { %v47_v43 = vld [vmem:[%s336_s1 + $0xf8] sm:$0xff]  ;;  %v198_v44 = vpack.c.bf16 %v29_v41, %v28_v40  ;;  %v30_v46 = vld [vmem:[%s336_s1 + $0x70] sm:$0xff]  ;;  %v14_v49 = vld [vmem:[%s337_s0] sm:$0xff] }
   0xc   :  { %v200_v45 = vpack.c.bf16 %v47_v43, %v46_v42  ;;  %v31_v47 = vld [vmem:[%s336_s1 + $0x78] sm:$0xff]  ;;  %v136_v51 = vld [vmem:[%s338_s2] ss:$0 sm:$0xff] }
   0xd   :  { %183 = vmatpush3.bf16.msra.mxu0 %v182_v19  ;;  %v202_v48 = vpack.c.bf16 %v31_v47, %v30_v46 }
   0xe   :  { %185 = vmatprep.subr.bf16.mxu0 %v184_v20 }
  0x11   :  { %187 = vmatpush3.bf16.msra.mxu0 %v186_v26 }
  0x12   :  { %189 = vmatprep.subr.bf16.mxu0 %v188_v27 }
  0x15   :  { %191 = vmatpush3.bf16.msra.mxu0 %v190_v32 }
  0x16   :  { %193 = vmatprep.subr.bf16.mxu0 %v192_v33 }
  0x19   :  { %195 = vmatpush3.bf16.msra.mxu0 %v194_v38 }
  0x1a   :  { %197 = vmatprep.subr.bf16.mxu0 %v196_v39 }
  0x1d   :  { %199 = vmatpush3.bf16.msra.mxu0 %v198_v44 }
  0x1e   :  { %201 = vmatprep.subr.bf16.mxu0 %v200_v45 }
  0x21   :  { %203 = vmatpush3.bf16.msra.mxu0 %v202_v48 }
  0x24   :  { %120 = vmatmul.mubr.f32.vlgmr.msra.gmra.mrb[0].mxu0 %v14_v49 }
  0xf7   :  { %v169_v50 = vpop.f32.mrb[0].mxu0 }
  0xf8   :  { %v170_v52 = vpop.f32.mrb[1].mxu0 }
  0xf9   :  { %v171_v53 = vadd.f32 %v170_v52, %v169_v50 }
  0xfb   :  { %v122_v54 = vadd.f32 %v171_v53, %v136_v51 }
  0xfd   :  { %v125_v55 = vsub.f32 0.0, %v122_v54 }
  0xff   :  { %v126_v56 = vmul.f32 1.442695, %v125_v55 }
 0x101   :  { %204 = vpow2.f32 %v126_v56 }
 0x10b   :  { %v205_v57 = vpop.eup %204 }
 0x10c   :  { %v128_v58 = vadd.f32 1.0, %v205_v57 }
 0x10e   :  { %206 = vrcp.f32 %v128_v58 }
 0x118   :  { %v207_v59 = vpop.eup %206 }
 0x119   :  { %131 = vst [vmem:[%s339_s3] sm:$0xff] %v207_v59 }

</bundles_post_ra>
